<compile_context>
chip_gen: v7x
topology: tpu7x:2x2x1
jax: 0.10.0
libtpu: 0.0.40
codegen_flags: <defaults>
</compile_context>

<pallas_src>
import functools

import jax
import jax.numpy as jnp
from jax.experimental import pallas as pl
from jax.experimental.pallas import tpu as pltpu


def _round_up(x, m):
    return ((x + m - 1) // m) * m


def _actor_kernel(x_ref, w1_ref, b1_ref, w2_ref, b2_ref, w3_ref, b3_ref, o_ref):
    cd = w1_ref.dtype  # MXU feed dtype (bf16 by default); accumulate in f32

    x = x_ref[...].astype(cd)

    h1 = jnp.dot(x, w1_ref[...], preferred_element_type=jnp.float32) + b1_ref[...]
    h1 = jnp.maximum(h1, 0.0)                          # f32 element-wise (VPU)

    h2 = jnp.dot(h1.astype(cd), w2_ref[...], preferred_element_type=jnp.float32) + b2_ref[...]
    h2 = jnp.maximum(h2, 0.0)

    logits = jnp.dot(h2.astype(cd), w3_ref[...], preferred_element_type=jnp.float32) + b3_ref[...]
    # Padded action lanes carry a -1e30 f32 bias over strictly-zero W3 columns, so
    # exp underflows to exactly 0 and the softmax over the padded 128-lane block
    # equals the softmax over the real actions.

    m = jnp.max(logits, axis=-1, keepdims=True)
    e = jnp.exp(logits - m)   # TODO(synk): optional bf16 exp path on v6e/v7x (no bf16 EUP on v5e)
    s = jnp.sum(e, axis=-1, keepdims=True)
    # approx reciprocal -> EUP slot; normalization error ~1e-3 rel, fine for sampling.
    o_ref[...] = (e * pl.reciprocal(s, approx=True)).astype(o_ref.dtype)


def prepare_actor_params(params, compute_dtype=jnp.bfloat16):
    """One-time weight prep (after init / each optimizer step) - NOT per forward call.

    Casts weights to the MXU feed dtype and lane-pads the last layer so the output
    store is lane-dense (multiple of 128). Biases stay f32 (the -1e30 pad trick
    relies on f32 bias arithmetic; padded W3 columns stay exactly zero).
    """
    w1, b1, w2, b2, w3, b3 = params
    A = w3.shape[1]
    A_pad = _round_up(max(A, 128), 128)  # keep at 128: minimum lane-dense width, don't grow it
    w3p = jnp.pad(w3, ((0, 0), (0, A_pad - A)))                        # pad cols exactly 0
    b3p = jnp.pad(b3, ((0, 0), (0, A_pad - A)), constant_values=-1e30)  # must stay f32
    return (w1.astype(compute_dtype), b1.astype(jnp.float32),
            w2.astype(compute_dtype), b2.astype(jnp.float32),
            w3p.astype(compute_dtype), b3p.astype(jnp.float32))


def _choose_tile(B, batch_tile):
    """Rows per grid step: multiple of 8, prefers dividing round_up(B, 8)."""
    B8 = _round_up(B, 8)
    if B8 <= batch_tile:
        if B8 >= 512:                                  # split so grid >= 2 -> both v7x TCs
            return _round_up(pl.cdiv(B8, 2), 8)
        return B8                                      # tiny batch: single tile, grid=(1,)
    lo = max(batch_tile // 2, 8)
    for t in range(batch_tile, lo - 1, -8):            # divisor near batch_tile -> no wasted
        if B8 % t == 0:                                # rows in the boundary block
            return t
    return batch_tile                                  # fall back: masked partial last block


def _vmem_bytes(tile, D, H1, H2, A_pad, out_itemsize):
    io = 2 * tile * (D * 4 + A_pad * out_itemsize)                       # double-buffered in/out
    weights = 2 * (2 * (D * H1 + H1 * H2 + H2 * A_pad) + 4 * (H1 + H2 + A_pad))
    temps = 4 * tile * (H1 + H2 + 2 * A_pad)                             # f32 h1/h2/logits/exp
    return io + weights + temps + (4 << 20)                              # headroom


@functools.partial(
    jax.jit,
    static_argnames=("n_actions", "batch_tile", "out_dtype", "return_padded"))
def actor_forward(state, prepared_params, *, n_actions=None, batch_tile=512,
                  out_dtype=jnp.bfloat16, return_padded=False):
    """state: (B, input_dims) f32 -> action probabilities.

    return_padded=True returns the (B, A_pad) bf16 block directly (padded action
    lanes are exactly 0 probability), avoiding the extra XLA column-slice copy.
    """
    w1, b1, w2, b2, w3, b3 = prepared_params
    B, D = state.shape
    H1 = w1.shape[1]
    H2 = w2.shape[1]
    A_pad = w3.shape[1]

    batch_tile = _round_up(batch_tile, 8)
    tile = _choose_tile(B, batch_tile)
    grid = (pl.cdiv(B, tile),)

    out = pl.pallas_call(
        _actor_kernel,
        out_shape=jax.ShapeDtypeStruct((B, A_pad), out_dtype),
        grid_spec=pltpu.PrefetchScalarGridSpec(
            num_scalar_prefetch=0,
            grid=grid,
            in_specs=[
                pl.BlockSpec((tile, D), lambda i: (i, 0)),    # state tile
                pl.BlockSpec((D, H1), lambda i: (0, 0)),      # W1 (resident across steps)
                pl.BlockSpec((1, H1), lambda i: (0, 0)),      # b1
                pl.BlockSpec((H1, H2), lambda i: (0, 0)),     # W2
                pl.BlockSpec((1, H2), lambda i: (0, 0)),      # b2
                pl.BlockSpec((H2, A_pad), lambda i: (0, 0)),  # W3 (lane-padded, zero pad cols)
                pl.BlockSpec((1, A_pad), lambda i: (0, 0)),   # b3 (-1e30 in pad lanes, f32)
            ],
            out_specs=pl.BlockSpec((tile, A_pad), lambda i: (i, 0)),
        ),
        compiler_params=pltpu.CompilerParams(
            dimension_semantics=("parallel",),                # shards batch across v7x's 2 TCs
            vmem_limit_bytes=min(
                max(_vmem_bytes(tile, D, H1, H2, A_pad, jnp.dtype(out_dtype).itemsize),
                    32 << 20),
                48 << 20),                                    # raise v5e's 16 MiB scoped default
        ),
    )(state, w1, b1, w2, b2, w3, b3)

    if return_padded:
        return out   # padded lanes are exact zeros; Categorical sampling is identical
    if n_actions is None:
        raise ValueError("n_actions must be provided when return_padded=False")
    return out[:, :n_actions]


def init_actor_params(key, input_dims, n_actions, fc1_dims=256, fc2_dims=256):
    """Deterministic init mimicking torch.nn.Linear default (uniform +/- 1/sqrt(fan_in))."""
    ks = jax.random.split(key, 6)

    def linear(kw, kb, fan_in, fan_out):
        bound = 1.0 / jnp.sqrt(jnp.float32(fan_in))
        w = jax.random.uniform(kw, (fan_in, fan_out), jnp.float32, -bound, bound)
        b = jax.random.uniform(kb, (1, fan_out), jnp.float32, -bound, bound)
        return w, b

    w1, b1 = linear(ks[0], ks[1], input_dims, fc1_dims)
    w2, b2 = linear(ks[2], ks[3], fc1_dims, fc2_dims)
    w3, b3 = linear(ks[4], ks[5], fc2_dims, n_actions)
    return (w1, b1, w2, b2, w3, b3)


def _reference_forward(state, params, compute_dtype=jnp.bfloat16):
    # Mirrors the kernel's dtype policy (bf16 MXU inputs, f32 accumulate/element-wise).
    # NOTE: this diverges from the pure-f32 torch ActorNetwork at the ~1e-2 level.
    w1, b1, w2, b2, w3, b3 = params
    cd = compute_dtype
    h1 = jnp.maximum(
        jnp.dot(state.astype(cd), w1.astype(cd), preferred_element_type=jnp.float32) + b1, 0.0)
    h2 = jnp.maximum(
        jnp.dot(h1.astype(cd), w2.astype(cd), preferred_element_type=jnp.float32) + b2, 0.0)
    logits = jnp.dot(h2.astype(cd), w3.astype(cd), preferred_element_type=jnp.float32) + b3
    return jax.nn.softmax(logits, axis=-1)


if __name__ == "__main__":
    key = jax.random.PRNGKey(0)
    k_param, k_state, k_big = jax.random.split(key, 3)

    input_dims = 32
    n_actions = 4
    params = init_actor_params(k_param, input_dims, n_actions, fc1_dims=256, fc2_dims=256)
    prepared = prepare_actor_params(params)   # one-time prep, hoisted out of the hot path

    # Small inference-shaped batch: tile=8, grid=(1,).
    state = jax.random.normal(k_state, (8, input_dims), dtype=jnp.float32)
    probs = jax.block_until_ready(actor_forward(state, prepared, n_actions=n_actions))
    ref = _reference_forward(state, params)
    assert probs.shape == (8, n_actions)
    p32 = probs.astype(jnp.float32)
    assert jnp.allclose(jnp.sum(p32, axis=-1), 1.0, atol=2e-2)
    assert jnp.allclose(p32, ref, atol=2e-2, rtol=2e-2)

    # "No slice" consumption path: padded action lanes are exactly 0 probability.
    probs_pad = jax.block_until_ready(actor_forward(state, prepared, return_padded=True))
    assert probs_pad.shape == (8, 128)
    assert jnp.all(probs_pad[:, n_actions:] == 0)
    assert jnp.allclose(probs_pad[:, :n_actions].astype(jnp.float32), p32, atol=1e-6)

    # Ragged training-shaped batch: cdiv grid + masked partial last block (grid=(3,)).
    big_state = jax.random.normal(k_big, (300, input_dims), dtype=jnp.float32)
    probs_big = jax.block_until_ready(
        actor_forward(big_state, prepared, n_actions=n_actions, batch_tile=128))
    ref_big = _reference_forward(big_state, params)
    assert probs_big.shape == (300, n_actions)
    pb32 = probs_big.astype(jnp.float32)
    assert jnp.allclose(jnp.sum(pb32, axis=-1), 1.0, atol=2e-2)
    assert jnp.allclose(pb32, ref_big, atol=2e-2, rtol=2e-2)

    # TODO(synk): the torch module returns a Categorical distribution object; we return its
    # probability tensor (in-kernel Gumbel-max sampling is a follow-up for the act() path).
    print("KERNEL_OK")
</pallas_src>

<mosaic_0001>
module attributes {stable_mosaic.version = 11 : i64} {
  func.func @_actor_kernel(%arg0: i32, %arg1: memref<8x32xf32, #tpu.memory_space<vmem>>, %arg2: memref<32x256xbf16, #tpu.memory_space<vmem>>, %arg3: memref<1x256xf32, #tpu.memory_space<vmem>>, %arg4: memref<256x256xbf16, #tpu.memory_space<vmem>>, %arg5: memref<1x256xf32, #tpu.memory_space<vmem>>, %arg6: memref<256x128xbf16, #tpu.memory_space<vmem>>, %arg7: memref<1x128xf32, #tpu.memory_space<vmem>>, %arg8: memref<8x128xbf16, #tpu.memory_space<vmem>>) attributes {dimension_semantics = [#tpu.dimension_semantics<parallel>], iteration_bounds = array<i64: 1>, scalar_prefetch = 0 : i64, scratch_operands = 0 : i64, tpu.core_type = #tpu.core_type<tc>, window_params = [{transform_indices = @transform_0, window_bounds = array<i64: 8, 32>}, {pipeline_mode = #tpu.pipeline_mode<synchronous>, transform_indices = @transform_1, window_bounds = array<i64: 32, 256>}, {pipeline_mode = #tpu.pipeline_mode<synchronous>, transform_indices = @transform_2, window_bounds = array<i64: 1, 256>}, {pipeline_mode = #tpu.pipeline_mode<synchronous>, transform_indices = @transform_3, window_bounds = array<i64: 256, 256>}, {pipeline_mode = #tpu.pipeline_mode<synchronous>, transform_indices = @transform_4, window_bounds = array<i64: 1, 256>}, {pipeline_mode = #tpu.pipeline_mode<synchronous>, transform_indices = @transform_5, window_bounds = array<i64: 256, 128>}, {pipeline_mode = #tpu.pipeline_mode<synchronous>, transform_indices = @transform_6, window_bounds = array<i64: 1, 128>}, {transform_indices = @transform_7, window_bounds = array<i64: 8, 128>}]} {
    %c0 = arith.constant 0 : index
    %c0_0 = arith.constant 0 : index
    %0 = vector.load %arg1[%c0, %c0_0] : memref<8x32xf32, #tpu.memory_space<vmem>>, vector<8x32xf32>
    %1 = arith.truncf %0 : vector<8x32xf32> to vector<8x32xbf16>
    %c0_1 = arith.constant 0 : index
    %c0_2 = arith.constant 0 : index
    %2 = vector.load %arg2[%c0_1, %c0_2] : memref<32x256xbf16, #tpu.memory_space<vmem>>, vector<32x256xbf16>
    %cst = arith.constant dense<0.000000e+00> : vector<8x256xf32>
    %3 = tpu.matmul %1, %2, %cst {dimension_numbers = #tpu.dot_dimension_numbers<[1], [0], [0], [1], [0, 0, 1, 1], [], []>} : vector<8x32xbf16>, vector<32x256xbf16>, vector<8x256xf32> -> vector<8x256xf32>
    %c0_3 = arith.constant 0 : index
    %c0_4 = arith.constant 0 : index
    %4 = vector.load %arg3[%c0_3, %c0_4] : memref<1x256xf32, #tpu.memory_space<vmem>>, vector<1x256xf32>
    %5 = vector.broadcast %4 : vector<1x256xf32> to vector<8x256xf32>
    %6 = arith.addf %3, %5 : vector<8x256xf32>
    %cst_5 = arith.constant 0.000000e+00 : f32
    %7 = vector.broadcast %cst_5 : f32 to vector<8x256xf32>
    %8 = arith.maximumf %6, %7 : vector<8x256xf32>
    %9 = arith.truncf %8 : vector<8x256xf32> to vector<8x256xbf16>
    %c0_6 = arith.constant 0 : index
    %c0_7 = arith.constant 0 : index
    %10 = vector.load %arg4[%c0_6, %c0_7] : memref<256x256xbf16, #tpu.memory_space<vmem>>, vector<256x256xbf16>
    %cst_8 = arith.constant dense<0.000000e+00> : vector<8x256xf32>
    %11 = tpu.matmul %9, %10, %cst_8 {dimension_numbers = #tpu.dot_dimension_numbers<[1], [0], [0], [1], [0, 0, 1, 1], [], []>} : vector<8x256xbf16>, vector<256x256xbf16>, vector<8x256xf32> -> vector<8x256xf32>
    %c0_9 = arith.constant 0 : index
    %c0_10 = arith.constant 0 : index
    %12 = vector.load %arg5[%c0_9, %c0_10] : memref<1x256xf32, #tpu.memory_space<vmem>>, vector<1x256xf32>
    %13 = vector.broadcast %12 : vector<1x256xf32> to vector<8x256xf32>
    %14 = arith.addf %11, %13 : vector<8x256xf32>
    %cst_11 = arith.constant 0.000000e+00 : f32
    %15 = vector.broadcast %cst_11 : f32 to vector<8x256xf32>
    %16 = arith.maximumf %14, %15 : vector<8x256xf32>
    %17 = arith.truncf %16 : vector<8x256xf32> to vector<8x256xbf16>
    %c0_12 = arith.constant 0 : index
    %c0_13 = arith.constant 0 : index
    %18 = vector.load %arg6[%c0_12, %c0_13] : memref<256x128xbf16, #tpu.memory_space<vmem>>, vector<256x128xbf16>
    %cst_14 = arith.constant dense<0.000000e+00> : vector<8x128xf32>
    %19 = tpu.matmul %17, %18, %cst_14 {dimension_numbers = #tpu.dot_dimension_numbers<[1], [0], [0], [1], [0, 0, 1, 1], [], []>} : vector<8x256xbf16>, vector<256x128xbf16>, vector<8x128xf32> -> vector<8x128xf32>
    %c0_15 = arith.constant 0 : index
    %c0_16 = arith.constant 0 : index
    %20 = vector.load %arg7[%c0_15, %c0_16] : memref<1x128xf32, #tpu.memory_space<vmem>>, vector<1x128xf32>
    %21 = vector.broadcast %20 : vector<1x128xf32> to vector<8x128xf32>
    %22 = arith.addf %19, %21 : vector<8x128xf32>
    %cst_17 = arith.constant dense<0xFF800000> : vector<8xf32>
    %23 = vector.multi_reduction <maximumf>, %22, %cst_17 [1] : vector<8x128xf32> to vector<8xf32>
    %24 = vector.shape_cast %23 : vector<8xf32> to vector<8x1xf32>
    %25 = vector.broadcast %24 : vector<8x1xf32> to vector<8x128xf32>
    %26 = arith.subf %22, %25 : vector<8x128xf32>
    %27 = math.exp %26 : vector<8x128xf32>
    %cst_18 = arith.constant dense<0.000000e+00> : vector<8xf32>
    %28 = vector.multi_reduction <add>, %27, %cst_18 [1] : vector<8x128xf32> to vector<8xf32>
    %29 = vector.shape_cast %28 : vector<8xf32> to vector<8x1xf32>
    %30 = tpu.reciprocal %29 {approx = true} : vector<8x1xf32> -> vector<8x1xf32>
    %31 = vector.broadcast %30 : vector<8x1xf32> to vector<8x128xf32>
    %32 = arith.mulf %27, %31 : vector<8x128xf32>
    %33 = arith.truncf %32 : vector<8x128xf32> to vector<8x128xbf16>
    %c0_19 = arith.constant 0 : index
    %c0_20 = arith.constant 0 : index
    %34 = vector.load %arg8[%c0_19, %c0_20] : memref<8x128xbf16, #tpu.memory_space<vmem>>, vector<8x128xbf16>
    tpu.vector_store %arg8[%c0_19, %c0_20], %33 {strides = array<i32>} : memref<8x128xbf16, #tpu.memory_space<vmem>>, vector<8x128xbf16>,
    return
  }
  func.func @transform_0(%arg0: i32) -> (i32, i32) {
    %c0_i32 = arith.constant 0 : i32
    %c0_i32_0 = arith.constant 0 : i32
    return %arg0, %c0_i32 : i32, i32
  }
  func.func @transform_1(%arg0: i32) -> (i32, i32) {
    %c0_i32 = arith.constant 0 : i32
    %c0_i32_0 = arith.constant 0 : i32
    %c0_i32_1 = arith.constant 0 : i32
    return %c0_i32, %c0_i32_0 : i32, i32
  }
  func.func @transform_2(%arg0: i32) -> (i32, i32) {
    %c0_i32 = arith.constant 0 : i32
    %c0_i32_0 = arith.constant 0 : i32
    %c0_i32_1 = arith.constant 0 : i32
    return %c0_i32, %c0_i32_0 : i32, i32
  }
  func.func @transform_3(%arg0: i32) -> (i32, i32) {
    %c0_i32 = arith.constant 0 : i32
    %c0_i32_0 = arith.constant 0 : i32
    %c0_i32_1 = arith.constant 0 : i32
    return %c0_i32, %c0_i32_0 : i32, i32
  }
  func.func @transform_4(%arg0: i32) -> (i32, i32) {
    %c0_i32 = arith.constant 0 : i32
    %c0_i32_0 = arith.constant 0 : i32
    %c0_i32_1 = arith.constant 0 : i32
    return %c0_i32, %c0_i32_0 : i32, i32
  }
  func.func @transform_5(%arg0: i32) -> (i32, i32) {
    %c0_i32 = arith.constant 0 : i32
    %c0_i32_0 = arith.constant 0 : i32
    %c0_i32_1 = arith.constant 0 : i32
    return %c0_i32, %c0_i32_0 : i32, i32
  }
  func.func @transform_6(%arg0: i32) -> (i32, i32) {
    %c0_i32 = arith.constant 0 : i32
    %c0_i32_0 = arith.constant 0 : i32
    %c0_i32_1 = arith.constant 0 : i32
    return %c0_i32, %c0_i32_0 : i32, i32
  }
  func.func @transform_7(%arg0: i32) -> (i32, i32) {
    %c0_i32 = arith.constant 0 : i32
    %c0_i32_0 = arith.constant 0 : i32
    return %arg0, %c0_i32 : i32, i32
  }
}

</mosaic_0001>

<bundles_post_ra>
// kernel: actor_forward.1
= control target key start
LH: loop header
LB: loop body
LE: loop exit
PB: predicated region body
PF: predicated region fallthrough
CT: control target
= control target key end

     0   :  { %12 = vsyncpa [#allocation3], 0  ;;  %s977_s0 = inlined_call_operand.hbm [shape: f32[8,32], index: 0, kind: input, shape index: {}]   ;;  %s978_s1 = inlined_call_operand.hbm [shape: bf16[32,256], index: 1, kind: input, shape index: {}]   ;;  %s979_s2 = inlined_call_operand.vmem [shape: f32[1,256], index: 2, kind: input, shape index: {}]   ;;  %s980_s3 = inlined_call_operand.hbm [shape: bf16[256,256], index: 3, kind: input, shape index: {}]   ;;  %s981_s4 = inlined_call_operand.vmem [shape: f32[1,256], index: 4, kind: input, shape index: {}]   ;;  %s982_s5 = inlined_call_operand.hbm [shape: bf16[256,128], index: 5, kind: input, shape index: {}]   ;;  %s983_s6 = inlined_call_operand.vmem [shape: f32[1,128], index: 6, kind: input, shape index: {}]   ;;  %s984_s7 = inlined_call_operand.vmem [shape: bf16[8,128], index: 7, kind: output, shape index: {}]  }
   0x1   :  { %13 = vsyncpa [#allocation5], 0 }
   0x2   :  { %14 = vsyncpa [#allocation8], 0  ;;  %s862_s24 = smov [#allocation4]   ;;  %s768_s28 = scalar_lea.hbm %s978_s1, 512 }
   0x3   :  { %s30_s25 = sshll.u32 %s862_s24, 4  ;;  %p769_p0 = scmp.ne.s32.totalorder %s978_s1, %s768_s28  ;;  %s31_s25 = int_to_ptr.vmem [resolvable:$true] %s30_s25 }
   0x4   :  { %p772_p1 = scmp.lt.u32.totalorder %s768_s28, %s978_s1 }
   0x6   :  { %p774_p2 = pnand %p772_p1, %p769_p0 }
   0x8   :  { %777 = shalt.err (!%p774_p2)
}
   0x9   :  { %s778_s10 = scalar_lea.vmem %s31_s25, 512  ;;  %p783_p4 = scmp.lt.s32.totalorder %s31_s25, %s31_s25 }
   0xa   :  { %p779_p3 = scmp.ne.s32.totalorder %s31_s25, %s778_s10  ;;  %p784_p5 = scmp.lt.s32.totalorder %s778_s10, %s778_s10 }
   0xc   :  { %p785_p6 = por %p784_p5, %p783_p4 }
   0xe   :  { %p786_p7 = pnand %p785_p6, %p779_p3 }
  0x10   :  { %789 = shalt.err (!%p786_p7)
}
  0x11   :  { %s863_s11 = smov 128   ;;  %s864_s12 = smov 8  }
  0x12   :  { %36 = dma.hbm_to_vmem [thread:$0]  %s978_s1, 512, %s31_s25, [#allocation5], %s863_s11, %s863_s11, %s864_s12  }
  0x13   :  { %s865_s15 = smov [#allocation2]   ;;  %s866_s17 = smov [#allocation6]  }
  0x14   :  { %s21_s16 = sshll.u32 %s865_s15, 4  ;;  %s44_s18 = sshll.u32 %s866_s17, 4  ;;  %s22_s16 = int_to_ptr.vmem [resolvable:$true] %s21_s16  ;;  %s45_s18 = int_to_ptr.vmem [resolvable:$true] %s44_s18 }
  0x15   :  { %s790_s21 = scalar_lea.hbm %s977_s0, 128 }
  0x16   :  { %p791_p8 = scmp.ne.s32.totalorder %s977_s0, %s790_s21  ;;  %p794_p9 = scmp.lt.u32.totalorder %s790_s21, %s977_s0 }
  0x18   :  { %p796_p10 = pnand %p794_p9, %p791_p8 }
  0x1a   :  { %799 = shalt.err (!%p796_p10)
}
  0x1b   :  { %s800_s1 = scalar_lea.vmem %s22_s16, 128  ;;  %p805_p12 = scmp.lt.s32.totalorder %s22_s16, %s22_s16 }
  0x1c   :  { %p801_p11 = scmp.ne.s32.totalorder %s22_s16, %s800_s1  ;;  %p806_p13 = scmp.lt.s32.totalorder %s800_s1, %s800_s1 }
  0x1e   :  { %p807_p0 = por %p806_p13, %p805_p12 }
  0x20   :  { %p808_p1 = pnand %p807_p0, %p801_p11 }
  0x22   :  { %811 = shalt.err (!%p808_p1)
}
  0x23   :  { %24 = dma.hbm_to_vmem [thread:$0]  %s977_s0, 128, %s22_s16, [#allocation3]  }
  0x24   :  { %s812_s30 = scalar_lea.hbm %s980_s3, 4096 }
  0x25   :  { %p813_p2 = scmp.ne.s32.totalorder %s980_s3, %s812_s30  ;;  %p816_p3 = scmp.lt.u32.totalorder %s812_s30, %s980_s3 }
  0x27   :  { %p818_p4 = pnand %p816_p3, %p813_p2 }
  0x29   :  { %821 = shalt.err (!%p818_p4)
}
  0x2a   :  { %s822_s14 = scalar_lea.vmem %s45_s18, 4096  ;;  %p827_p6 = scmp.lt.s32.totalorder %s45_s18, %s45_s18 }
  0x2b   :  { %p823_p5 = scmp.ne.s32.totalorder %s45_s18, %s822_s14  ;;  %p828_p7 = scmp.lt.s32.totalorder %s822_s14, %s822_s14 }
  0x2d   :  { %p829_p8 = por %p828_p7, %p827_p6 }
  0x2f   :  { %p830_p9 = pnand %p829_p8, %p823_p5 }
  0x31   :  { %833 = shalt.err (!%p830_p9)
}
  0x32   :  { %50 = dma.hbm_to_vmem [thread:$0]  %s980_s3, 4096, %s45_s18, [#allocation5], %s863_s11, %s863_s11, %s864_s12  }
  0x33   :  { %s867_s16 = smov [#allocation7]   ;;  %s834_s21 = scalar_lea.hbm %s982_s5, 2048 }
  0x34   :  { %s58_s17 = sshll.u32 %s867_s16, 4  ;;  %p835_p10 = scmp.ne.s32.totalorder %s982_s5, %s834_s21  ;;  %s59_s17 = int_to_ptr.vmem [resolvable:$true] %s58_s17 }
  0x35   :  { %p838_p11 = scmp.lt.u32.totalorder %s834_s21, %s982_s5 }
  0x37   :  { %p840_p12 = pnand %p838_p11, %p835_p10 }
  0x39   :  { %843 = shalt.err (!%p840_p12)
}
  0x3a   :  { %s844_s1 = scalar_lea.vmem %s59_s17, 2048  ;;  %p849_p0 = scmp.lt.s32.totalorder %s59_s17, %s59_s17 }
  0x3b   :  { %p845_p13 = scmp.ne.s32.totalorder %s59_s17, %s844_s1  ;;  %p850_p1 = scmp.lt.s32.totalorder %s844_s1, %s844_s1 }
  0x3d   :  { %p851_p2 = por %p850_p1, %p849_p0 }
  0x3f   :  { %p852_p3 = pnand %p851_p2, %p845_p13 }
  0x41   :  { %855 = shalt.err (!%p852_p3)
}
  0x42   :  { %s868_s3 = smov 64   ;;  %s869_s11 = smov 4  }
  0x43   :  { %64 = dma.hbm_to_vmem [thread:$0]  %s982_s5, 2048, %s59_s17, [#allocation8], %s868_s3, %s868_s3, %s869_s11  }
  0x44   :  { %856 = dma.done.wait [#allocation3], 128  }
  0x45   :  { %857 = vsyncadd [#allocation3], 4294967168 }
  0x46   :  { %858 = dma.done.wait [#allocation5], 4608  }
  0x47   :  { %859 = vsyncadd [#allocation5], 4294962688 }
  0x48   :  { %860 = dma.done.wait [#allocation8], 2048  }
  0x49   :  { %861 = vsyncadd [#allocation8], 4294965248  ;;  %v870_v0 = vmov 0   ;;  %v694_v1 = vld [vmem:[#allocation4 + $0x4] ss:$8 sps:$4 sm:$0xff]   ;;  %v80_v5 = vld [vmem:[#allocation2] sm:$0xff]  ;;  %v88_v51 = vlaneseq }
  0x4a   :  { %154 = vmatprep.mubr.bf16.mxu0 %v870_v0  ;;  %v696_v2 = vld [vmem:[#allocation4] ss:$8 sps:$4 sm:$0xff]   ;;  %122 = vmatprep.subr.bf16.mxu0 %v694_v1  ;;  %v697_v3 = vld [vmem:[#allocation4 + $0x14] ss:$8 sps:$4 sm:$0xff]   ;;  %v699_v4 = vld [vmem:[#allocation4 + $0x10] ss:$8 sps:$4 sm:$0xff]   ;;  %v81_v9 = vpack.c.bf16 %v80_v5, %v80_v5 }
  0x4b   :  { %123 = vmatpush1.bf16.msra.mxu0 %v696_v2  ;;  %v700_v6 = vld [vmem:[#allocation6 + $0x4] ss:$8 sps:$4 sm:$0xff]   ;;  %v702_v7 = vld [vmem:[#allocation6] ss:$8 sps:$4 sm:$0xff]   ;;  %v703_v8 = vld [vmem:[#allocation6 + $0x14] ss:$8 sps:$4 sm:$0xff]  }
  0x4c   :  { %124 = vmatprep.subr.bf16.mxu0 %v697_v3  ;;  %371 = vmatprep.subr.bf16.mxu1 %v700_v6  ;;  %v705_v10 = vld [vmem:[#allocation6 + $0x10] ss:$8 sps:$4 sm:$0xff]   ;;  %vm118_vm0 = vcmask 261120   ;;  %v706_v11 = vld [vmem:[#allocation6 + $0x24] ss:$8 sps:$4 sm:$0xff]   ;;  %v89_v52 = vshrl.u32 %v88_v51, 7 }
  0x4d   :  { %372 = vmatpush1.bf16.msra.mxu1 %v702_v7  ;;  %v708_v12 = vld [vmem:[#allocation6 + $0x20] ss:$8 sps:$4 sm:$0xff]   ;;  %v709_v13 = vld [vmem:[#allocation6 + $0x34] ss:$8 sps:$4 sm:$0xff]   ;;  %v711_v14 = vld [vmem:[#allocation6 + $0x30] ss:$8 sps:$4 sm:$0xff]  }
  0x4e   :  { %373 = vmatprep.subr.bf16.mxu1 %v703_v8  ;;  %v712_v15 = vld [vmem:[#allocation6 + $0x44] ss:$8 sps:$4 sm:$0xff]   ;;  %v714_v16 = vld [vmem:[#allocation6 + $0x40] ss:$8 sps:$4 sm:$0xff]   ;;  %v715_v17 = vld [vmem:[#allocation6 + $0x54] ss:$8 sps:$4 sm:$0xff]  }
  0x4f   :  { %125 = vmatpush1.bf16.msra.mxu0 %v699_v4  ;;  %v717_v18 = vld [vmem:[#allocation6 + $0x50] ss:$8 sps:$4 sm:$0xff]   ;;  %v718_v19 = vld [vmem:[#allocation6 + $0x64] ss:$8 sps:$4 sm:$0xff]   ;;  %v720_v20 = vld [vmem:[#allocation6 + $0x60] ss:$8 sps:$4 sm:$0xff]  }
  0x50   :  { %v721_v21 = vld [vmem:[#allocation6 + $0x74] ss:$8 sps:$4 sm:$0xff]   ;;  %v723_v22 = vld [vmem:[#allocation6 + $0x70] ss:$8 sps:$4 sm:$0xff]   ;;  %v724_v23 = vld [vmem:[#allocation6 + $0x84] ss:$8 sps:$4 sm:$0xff]  }
  0x51   :  { %374 = vmatpush1.bf16.msra.mxu1 %v705_v10  ;;  %v726_v24 = vld [vmem:[#allocation6 + $0x80] ss:$8 sps:$4 sm:$0xff]   ;;  %v727_v25 = vld [vmem:[#allocation6 + $0x94] ss:$8 sps:$4 sm:$0xff]   ;;  %v729_v26 = vld [vmem:[#allocation6 + $0x90] ss:$8 sps:$4 sm:$0xff]  }
  0x52   :  { %613 = vmatmul.mubr.msk.bf16.vlgmr.msra.gmra.mrb[0].mxu0 %vm118_vm0, %v81_v9  ;;  %375 = vmatprep.subr.bf16.mxu1 %v706_v11  ;;  %v730_v27 = vld [vmem:[#allocation6 + $0xa4] ss:$8 sps:$4 sm:$0xff]   ;;  %v732_v28 = vld [vmem:[#allocation6 + $0xa0] ss:$8 sps:$4 sm:$0xff]   ;;  %v733_v29 = vld [vmem:[#allocation6 + $0xb4] ss:$8 sps:$4 sm:$0xff]  }
  0x53   :  { %v735_v30 = vld [vmem:[#allocation6 + $0xb0] ss:$8 sps:$4 sm:$0xff]   ;;  %v736_v31 = vld [vmem:[#allocation6 + $0xc4] ss:$8 sps:$4 sm:$0xff]   ;;  %v738_v32 = vld [vmem:[#allocation6 + $0xc0] ss:$8 sps:$4 sm:$0xff]  }
  0x54   :  { %v739_v33 = vld [vmem:[#allocation6 + $0xd4] ss:$8 sps:$4 sm:$0xff]   ;;  %v741_v34 = vld [vmem:[#allocation6 + $0xd0] ss:$8 sps:$4 sm:$0xff]   ;;  %v742_v35 = vld [vmem:[#allocation6 + $0xe4] ss:$8 sps:$4 sm:$0xff]  }
  0x55   :  { %376 = vmatpush1.bf16.msra.mxu1 %v708_v12  ;;  %v744_v36 = vld [vmem:[#allocation6 + $0xe0] ss:$8 sps:$4 sm:$0xff]   ;;  %v745_v37 = vld [vmem:[#allocation6 + $0xf4] ss:$8 sps:$4 sm:$0xff]   ;;  %v747_v38 = vld [vmem:[#allocation6 + $0xf0] ss:$8 sps:$4 sm:$0xff]  }
  0x56   :  { %377 = vmatprep.subr.bf16.mxu1 %v709_v13  ;;  %v748_v39 = vld [vmem:[#allocation7 + $0x40] sm:$0xff]   ;;  %v750_v41 = vld [vmem:[#allocation7 + $0x48] sm:$0xff]   ;;  %v752_v43 = vld [vmem:[#allocation7 + $0x50] sm:$0xff]   ;;  %v90_v53 = vsub.s32 0, %v89_v52  ;;  %v94_v55 = vsub.s32 1, %v89_v52 }
  0x57   :  { %v749_v40 = vld [vmem:[#allocation7] sm:$0xff]   ;;  %663 = vmatprep.subr.bf16.mxu0 %v748_v39  ;;  %v751_v42 = vld [vmem:[#allocation7 + $0x8] sm:$0xff]   ;;  %v753_v44 = vld [vmem:[#allocation7 + $0x10] sm:$0xff]  }
  0x58   :  { %664 = vmatpush3.bf16.msra.mxu0 %v749_v40  ;;  %v754_v45 = vld [vmem:[#allocation7 + $0x58] sm:$0xff]   ;;  %v756_v47 = vld [vmem:[#allocation7 + $0x60] sm:$0xff]   ;;  %v758_v49 = vld [vmem:[#allocation7 + $0x68] sm:$0xff]  }
  0x59   :  { %378 = vmatpush1.bf16.msra.mxu1 %v711_v14  ;;  %665 = vmatprep.subr.bf16.mxu0 %v750_v41  ;;  %v755_v46 = vld [vmem:[#allocation7 + $0x18] sm:$0xff]   ;;  %v757_v48 = vld [vmem:[#allocation7 + $0x20] sm:$0xff]   ;;  %v759_v50 = vld [vmem:[#allocation7 + $0x28] sm:$0xff]  }
  0x5a   :  { %379 = vmatprep.subr.bf16.mxu1 %v712_v15  ;;  %v86_v54 = vld [vmem:[%s979_s2] sm:$0x3]  ;;  %v760_v4 = vld [vmem:[#allocation7 + $0x70] sm:$0xff]  }
  0x5b   :  { %v91_v56 = vrot.slane %v86_v54, %v90_v53  ;;  %v95_v57 = vrot.slane %v86_v54, %v94_v55  ;;  %v761_v5 = vld [vmem:[#allocation7 + $0x30] sm:$0xff]   ;;  %v762_v6 = vld [vmem:[#allocation7 + $0x78] sm:$0xff]  }
  0x5c   :  { %666 = vmatpush3.bf16.msra.mxu0 %v751_v42  ;;  %v763_v7 = vld [vmem:[#allocation7 + $0x38] sm:$0xff]  }
  0x5d   :  { %380 = vmatpush1.bf16.msra.mxu1 %v714_v16  ;;  %667 = vmatprep.subr.bf16.mxu0 %v752_v43  ;;  %v199_v8 = vld [vmem:[%s981_s4] sm:$0x3] }
  0x5e   :  { %381 = vmatprep.subr.bf16.mxu1 %v715_v17  ;;  %v204_v9 = vrot.slane %v199_v8, %v90_v53  ;;  %v208_v10 = vrot.slane %v199_v8, %v94_v55 }
  0x60   :  { %668 = vmatpush3.bf16.msra.mxu0 %v753_v44 }
  0x61   :  { %382 = vmatpush1.bf16.msra.mxu1 %v717_v18  ;;  %669 = vmatprep.subr.bf16.mxu0 %v754_v45 }
  0x62   :  { %383 = vmatprep.subr.bf16.mxu1 %v718_v19 }
  0x64   :  { %670 = vmatpush3.bf16.msra.mxu0 %v755_v46 }
  0x65   :  { %384 = vmatpush1.bf16.msra.mxu1 %v720_v20  ;;  %671 = vmatprep.subr.bf16.mxu0 %v756_v47 }
  0x66   :  { %385 = vmatprep.subr.bf16.mxu1 %v721_v21 }
  0x68   :  { %672 = vmatpush3.bf16.msra.mxu0 %v757_v48 }
  0x69   :  { %386 = vmatpush1.bf16.msra.mxu1 %v723_v22  ;;  %673 = vmatprep.subr.bf16.mxu0 %v758_v49 }
  0x6a   :  { %387 = vmatprep.subr.bf16.mxu1 %v724_v23  ;;  %v646_v23 = vld [vmem:[%s983_s6] ss:$0 sm:$0xff] }
  0x6c   :  { %674 = vmatpush3.bf16.msra.mxu0 %v759_v50 }
  0x6d   :  { %388 = vmatpush1.bf16.msra.mxu1 %v726_v24  ;;  %675 = vmatprep.subr.bf16.mxu0 %v760_v4 }
  0x6e   :  { %389 = vmatprep.subr.bf16.mxu1 %v727_v25 }
  0x70   :  { %676 = vmatpush3.bf16.msra.mxu0 %v761_v5 }
  0x71   :  { %390 = vmatpush1.bf16.msra.mxu1 %v729_v26  ;;  %677 = vmatprep.subr.bf16.mxu0 %v762_v6 }
  0x72   :  { %391 = vmatprep.subr.bf16.mxu1 %v730_v27 }
  0x74   :  { %678 = vmatpush3.bf16.msra.mxu0 %v763_v7 }
  0x75   :  { %392 = vmatpush1.bf16.msra.mxu1 %v732_v28 }
  0x76   :  { %393 = vmatprep.subr.bf16.mxu1 %v733_v29 }
  0x79   :  { %394 = vmatpush1.bf16.msra.mxu1 %v735_v30 }
  0x7a   :  { %395 = vmatprep.subr.bf16.mxu1 %v736_v31 }
  0x7d   :  { %396 = vmatpush1.bf16.msra.mxu1 %v738_v32 }
  0x7e   :  { %397 = vmatprep.subr.bf16.mxu1 %v739_v33 }
  0x81   :  { %398 = vmatpush1.bf16.msra.mxu1 %v741_v34 }
  0x82   :  { %399 = vmatprep.subr.bf16.mxu1 %v742_v35 }
  0x85   :  { %400 = vmatpush1.bf16.msra.mxu1 %v744_v36 }
  0x86   :  { %401 = vmatprep.subr.bf16.mxu1 %v745_v37 }
  0x89   :  { %402 = vmatpush1.bf16.msra.mxu1 %v747_v38 }
 0x125   :  { %v156_v58 = vpop.f32.mrb[0].mxu0 }
 0x126   :  { %v157_v59 = vadd.f32 %v156_v58, %v91_v56  ;;  %v158_v60 = vpop.f32.mrb[1].mxu0 }
 0x127   :  { %v159_v61 = vadd.f32 %v158_v60, %v95_v57  ;;  %v160_v62 = vpop.f32.mrb[2].mxu0 }
 0x128   :  { %v163_v63 = vmax.f32 %v157_v59, 0.0  ;;  %v161_v0 = vpop.f32.mrb[3].mxu0 }
 0x129   :  { %v164_v1 = vmax.f32 %v159_v61, 0.0 }
 0x12a   :  { %v165_v3 = vpack.c.bf16 %v163_v63, %v163_v63 }
 0x12b   :  { %v166_v2 = vpack.c.bf16 %v164_v1, %v164_v1 }
 0x12d   :  { %403 = vmatprep.mubr.bf16.mxu1 %v166_v2 }
 0x12e   :  { %404 = vmatmul.mubr.bf16.vlgmr.msra.gmra.mrb[0].mxu1 %v165_v3 }
 0x201   :  { %v405_v11 = vpop.f32.mrb[0].mxu1 }
 0x202   :  { %v406_v12 = vadd.f32 %v405_v11, %v204_v9  ;;  %v407_v13 = vpop.f32.mrb[1].mxu1 }
 0x203   :  { %v408_v14 = vadd.f32 %v407_v13, %v208_v10  ;;  %v409_v15 = vpop.f32.mrb[2].mxu1 }
 0x204   :  { %v412_v16 = vmax.f32 %v406_v12, 0.0  ;;  %v410_v17 = vpop.f32.mrb[3].mxu1 }
 0x205   :  { %v413_v18 = vmax.f32 %v408_v14, 0.0 }
 0x206   :  { %v414_v20 = vpack.c.bf16 %v412_v16, %v412_v16 }
 0x207   :  { %v415_v19 = vpack.c.bf16 %v413_v18, %v413_v18 }
 0x209   :  { %583 = vmatprep.mubr.bf16.mxu0 %v415_v19 }
 0x20a   :  { %584 = vmatmul.mubr.bf16.vlgmr.msra.gmra.mrb[4].mxu0 %v414_v20 }
 0x2dd   :  { %v679_v21 = vpop.f32.mrb[4].mxu0 }
 0x2de   :  { %v680_v22 = vpop.f32.mrb[5].mxu0 }
 0x2df   :  { %v681_v24 = vadd.f32 %v680_v22, %v679_v21  ;;  %v682_v25 = vpop.f32.mrb[6].mxu0 }
 0x2e0   :  { %v683_v26 = vpop.f32.mrb[7].mxu0 }
 0x2e1   :  { %v586_v27 = vadd.f32 %v681_v24, %v646_v23 }
 0x2e3   :  { %591 = vmax.xlane.f32.xlu0 %v586_v27 }
 0x370   :  { %v592_v28 = vpop.xlane.xlu0 %591 }
 0x371   :  { %v593_v29 = vsub.f32 %v586_v27, %v592_v28 }
 0x373   :  { %v594_v30 = vmul.f32 1.442695, %v593_v29 }
 0x375   :  { %764 = vpow2.f32 %v594_v30 }
 0x37f   :  { %v765_v31 = vpop.eup %764 }
 0x380   :  { %596 = vadd.xlane.f32.xlu0 %v765_v31 }
 0x40d   :  { %v597_v32 = vpop.xlane.xlu0 %596 }
 0x40e   :  { %766 = vrcp.f32 %v597_v32 }
 0x418   :  { %v767_v33 = vpop.eup %766 }
 0x419   :  { %v599_v34 = vmul.f32 %v767_v33, %v765_v31 }
 0x41b   :  { %v600_v35 = vpack.c.bf16 %v599_v34, %v599_v34 }
 0x41d   :  { %601 = vst [vmem:[%s984_s7] sm:$0xf] %v600_v35 }
 0x41e   :  { %606 = vsyncpa [#allocation3], 1 }
 0x41f   :  { %607 = vsyncpa [#allocation5], 1 }
 0x420   :  { %608 = vsyncpa [#allocation8], 1 }

</bundles_post_ra>
